<compile_context>
chip_gen: v5e
topology: v5e:2x2
jax: 0.10.0
libtpu: 0.0.40
codegen_flags: <defaults>
</compile_context>

<pallas_src>
import math

import jax
import jax.numpy as jnp
from jax.experimental import pallas as pl
from jax.experimental.pallas import tpu as pltpu


def _round_up(x: int, mult: int) -> int:
    return ((x + mult - 1) // mult) * mult


def _fourier_kernel(x_ref, b_ref, out_ref):
    d = x_ref.shape[-1]
    if d <= 32:
        # Tiny contraction dim: VPU broadcast mul/adds beat a <10%-utilized MXU matmul.
        x = x_ref[...]
        b = b_ref[...]
        x_proj = x[:, 0:1] * b[0:1, :]
        for k in range(1, d):
            x_proj = x_proj + x[:, k : k + 1] * b[k : k + 1, :]
    else:
        x_proj = jnp.dot(x_ref[...], b_ref[...], preferred_element_type=jnp.float32)
    # EUP-bound hot path: one sin + one cos per projected element, then a single
    # lane-dense (rt, 2m) store (2m = 128 lanes for the default m = 64).
    out_ref[...] = jnp.concatenate(
        [jnp.sin(x_proj), jnp.cos(x_proj)], axis=-1
    ).astype(out_ref.dtype)


def fourier_features(x: jax.Array, B: jax.Array, *, row_tile: int | None = None) -> jax.Array:
    """[sin(2*pi*x@B), cos(2*pi*x@B)] via a row-tiled Pallas TPU kernel.

    x: (N, in_dim) float32
    B: (in_dim, mapping_size) float32
    returns: (N, 2*mapping_size) float32
    """
    N, d = x.shape
    d_b, m = B.shape
    assert d == d_b, "in_dim mismatch between x and B"
    out_w = 2 * m

    # Fold the 2*pi scale into the (tiny, constant) projection matrix on the host.
    # TODO(synk): ~1e-5-level rounding difference vs. computing 2*pi*(x@B) in f32;
    # well within the module's numerical noise but not bit-identical.
    b_scaled = (2.0 * math.pi) * B.astype(jnp.float32)

    if row_tile is None:
        # Size the row tile from a conservative VMEM budget (double-buffered x-in and
        # out blocks); 16 MiB of tiles fits every generation once vmem_limit_bytes is
        # raised, and 8192 rows keeps each DMA long.
        budget_bytes = 16 * 1024 * 1024
        bytes_per_row = 4 * (out_w + d) * 2  # f32, double-buffered in + out
        rt = max(budget_bytes // bytes_per_row, 8)
        rt = min(rt, 8192)
        # Keep >= ~8 grid steps when N allows it so v7x's two TensorCores both get work.
        rt = min(rt, max(_round_up(pl.cdiv(N, 8), 8), 8))
    else:
        rt = max(int(row_tile), 8)
    rt = _round_up(min(rt, _round_up(N, 8)), 8)
    grid = (pl.cdiv(N, rt),)  # ragged last block: Mosaic masks the OOB stores

    # Explicit scoped-VMEM limit: double-buffered tiles (~<= 16 MiB) + headroom.
    vmem_limit = 32 * 1024 * 1024

    cost = pl.CostEstimate(
        flops=2 * N * d * m,
        transcendentals=2 * N * m,
        bytes_accessed=4 * (N * d + d * m + N * out_w),
    )

    out = pl.pallas_call(
        _fourier_kernel,
        out_shape=jax.ShapeDtypeStruct((N, out_w), x.dtype),
        grid_spec=pltpu.PrefetchScalarGridSpec(
            num_scalar_prefetch=0,
            grid=grid,
            in_specs=[
                pl.BlockSpec((rt, d), lambda i: (i, 0)),
                pl.BlockSpec((d, m), lambda i: (0, 0)),  # B resident across the grid
            ],
            out_specs=pl.BlockSpec((rt, out_w), lambda i: (i, 0)),
        ),
        compiler_params=pltpu.CompilerParams(
            dimension_semantics=("parallel",),
            vmem_limit_bytes=vmem_limit,
        ),
        cost_estimate=cost,
    )(x, b_scaled)

    return out


def fourier_features_ref(x: jax.Array, B: jax.Array) -> jax.Array:
    x_proj = 2.0 * math.pi * (x @ B)
    return jnp.concatenate([jnp.sin(x_proj), jnp.cos(x_proj)], axis=-1)


if __name__ == "__main__":
    key = jax.random.PRNGKey(0)
    k_x, k_b, k_x2, k_x3 = jax.random.split(key, 4)

    # Module defaults: in_dim=2, mapping_size=64, scale=10.0
    in_dim, mapping_size, scale = 2, 64, 10.0

    # Deterministic synthetic stand-in for torch.randn(in_dim, mapping_size) * scale
    B = jax.random.normal(k_b, (in_dim, mapping_size), dtype=jnp.float32) * scale

    # Case 1: small batch of 2-D coordinates (module toy size).
    N1 = 8
    x1 = jax.random.uniform(k_x, (N1, in_dim), dtype=jnp.float32)
    out1 = jax.block_until_ready(fourier_features(x1, B))
    ref1 = fourier_features_ref(x1, B)
    assert out1.shape == (N1, 2 * mapping_size)
    assert jnp.allclose(out1, ref1, atol=1e-4, rtol=1e-4), "mismatch vs reference (N=8)"

    # Case 2: ragged N with an explicit small tile (exercises the cdiv/masked-store path).
    N2 = 300
    x2 = jax.random.uniform(k_x2, (N2, in_dim), dtype=jnp.float32)
    out2 = jax.block_until_ready(fourier_features(x2, B, row_tile=128))
    ref2 = fourier_features_ref(x2, B)
    assert out2.shape == (N2, 2 * mapping_size)
    assert jnp.allclose(out2, ref2, atol=1e-4, rtol=1e-4), "mismatch vs reference (N=300)"

    # Case 3: larger ragged N with the auto-sized tile (multi-step parallel grid).
    N3 = 5000
    x3 = jax.random.uniform(k_x3, (N3, in_dim), dtype=jnp.float32)
    out3 = jax.block_until_ready(fourier_features(x3, B))
    ref3 = fourier_features_ref(x3, B)
    assert out3.shape == (N3, 2 * mapping_size)
    assert jnp.allclose(out3, ref3, atol=1e-4, rtol=1e-4), "mismatch vs reference (N=5000)"

    print("KERNEL_OK")
</pallas_src>

<mosaic_0001>
module attributes {stable_mosaic.version = 11 : i64} {
  func.func @_fourier_kernel(%arg0: i32, %arg1: memref<8x2xf32, #tpu.memory_space<vmem>>, %arg2: memref<2x64xf32, #tpu.memory_space<vmem>>, %arg3: memref<8x128xf32, #tpu.memory_space<vmem>>) attributes {dimension_semantics = [#tpu.dimension_semantics<parallel>], iteration_bounds = array<i64: 1>, scalar_prefetch = 0 : i64, scratch_operands = 0 : i64, tpu.core_type = #tpu.core_type<tc>, window_params = [{transform_indices = @transform_0, window_bounds = array<i64: 8, 2>}, {pipeline_mode = #tpu.pipeline_mode<synchronous>, transform_indices = @transform_1, window_bounds = array<i64: 2, 64>}, {transform_indices = @transform_2, window_bounds = array<i64: 8, 128>}]} {
    %c0 = arith.constant 0 : index
    %c0_0 = arith.constant 0 : index
    %0 = vector.load %arg1[%c0, %c0_0] : memref<8x2xf32, #tpu.memory_space<vmem>>, vector<8x2xf32>
    %c0_1 = arith.constant 0 : index
    %c0_2 = arith.constant 0 : index
    %1 = vector.load %arg2[%c0_1, %c0_2] : memref<2x64xf32, #tpu.memory_space<vmem>>, vector<2x64xf32>
    %2 = vector.extract_strided_slice %0 {offsets = [0, 0], sizes = [8, 1], strides = [1, 1]} : vector<8x2xf32> to vector<8x1xf32>
    %3 = vector.extract_strided_slice %1 {offsets = [0, 0], sizes = [1, 64], strides = [1, 1]} : vector<2x64xf32> to vector<1x64xf32>
    %4 = vector.broadcast %2 : vector<8x1xf32> to vector<8x64xf32>
    %5 = vector.broadcast %3 : vector<1x64xf32> to vector<8x64xf32>
    %6 = arith.mulf %4, %5 : vector<8x64xf32>
    %7 = vector.extract_strided_slice %0 {offsets = [0, 1], sizes = [8, 1], strides = [1, 1]} : vector<8x2xf32> to vector<8x1xf32>
    %8 = vector.extract_strided_slice %1 {offsets = [1, 0], sizes = [1, 64], strides = [1, 1]} : vector<2x64xf32> to vector<1x64xf32>
    %9 = vector.broadcast %7 : vector<8x1xf32> to vector<8x64xf32>
    %10 = vector.broadcast %8 : vector<1x64xf32> to vector<8x64xf32>
    %11 = arith.mulf %9, %10 : vector<8x64xf32>
    %12 = arith.addf %6, %11 : vector<8x64xf32>
    %13 = math.sin %12 : vector<8x64xf32>
    %14 = math.cos %12 : vector<8x64xf32>
    %15 = tpu.concatenate %13, %14 in 1 : vector<8x64xf32>, vector<8x64xf32> -> vector<8x128xf32>
    %c0_3 = arith.constant 0 : index
    %c0_4 = arith.constant 0 : index
    %16 = vector.load %arg3[%c0_3, %c0_4] : memref<8x128xf32, #tpu.memory_space<vmem>>, vector<8x128xf32>
    tpu.vector_store %arg3[%c0_3, %c0_4], %15 {strides = array<i32>} : memref<8x128xf32, #tpu.memory_space<vmem>>, vector<8x128xf32>,
    return
  }
  func.func @transform_0(%arg0: i32) -> (i32, i32) {
    %c0_i32 = arith.constant 0 : i32
    %c0_i32_0 = arith.constant 0 : i32
    return %arg0, %c0_i32 : i32, i32
  }
  func.func @transform_1(%arg0: i32) -> (i32, i32) {
    %c0_i32 = arith.constant 0 : i32
    %c0_i32_0 = arith.constant 0 : i32
    %c0_i32_1 = arith.constant 0 : i32
    return %c0_i32, %c0_i32_0 : i32, i32
  }
  func.func @transform_2(%arg0: i32) -> (i32, i32) {
    %c0_i32 = arith.constant 0 : i32
    %c0_i32_0 = arith.constant 0 : i32
    return %arg0, %c0_i32 : i32, i32
  }
}

</mosaic_0001>

<bundles_post_ra>
// kernel: tpu_custom_call.1
= control target key start
LH: loop header
LB: loop body
LE: loop exit
PB: predicated region body
PF: predicated region fallthrough
CT: control target
= control target key end

     0   :  { %v404_v1 = vmov 0   ;;  %s499_s0 = inlined_call_operand.vmem [shape: f32[8,2], index: 0, kind: input, shape index: {}]   ;;  %s500_s1 = inlined_call_operand.vmem [shape: f32[2,64], index: 1, kind: input, shape index: {}]   ;;  %s501_s2 = inlined_call_operand.hbm [shape: f32[8,128], index: 2, kind: output, shape index: {}]  }
   0x1   :  { %v12_v0 = vld [vmem:[%s499_s0] sm:$0xff]  ;;  %376 = vset.pattern.permute.xlu0 %v404_v1 }
   0x2   :  { %7 = vsyncpa [#allocation3], 0  ;;  %16 = vperm.xlu0 %376, %v12_v0   ;;  %v405_v2 = vmov 1   ;;  %v13_v4 = vld [vmem:[%s500_s1] sm:$0x3]  ;;  %s412_s0 = smov 64  }
   0x3   :  { %v19_v5 = vperm.slane %v13_v4, 0  ;;  %v25_v6 = vperm.slane %v13_v4, 1  ;;  %v406_v22 = vmov 683565275   ;;  %v407_v24 = vmov 2475754826  }
   0x4   :  { %v408_v27 = vmov 2131351028   ;;  %v409_v30 = vmov 2102212464   ;;  %v410_v33 = vmov 920167782  }
   0x5   :  { %v411_v36 = vmov 1326507024   ;;  %s413_s1 = smov [#allocation2]   ;;  %s351_s16 = sshll.u32 %s501_s2, 4  ;;  %s352_s16 = int_to_ptr.hbm [resolvable:$true] %s351_s16 }
   0x6   :  { %s349_s13 = sshll.u32 %s413_s1, 4  ;;  %s350_s13 = int_to_ptr.vmem [resolvable:$true] %s349_s13 }
   0xa   :  { %377 = vset.pattern.permute.xlu0 %v405_v2 }
   0xb   :  { %22 = vperm.xlu0 %377, %v12_v0  }
  0x74   :  { %v17_v3 = vpop.permute.xlu0 %16 }
  0x75   :  { %v20_v8 = vmul.f32 %v19_v5, %v17_v3 }
  0x7d   :  { %v23_v7 = vpop.permute.xlu0 %22 }
  0x7e   :  { %v26_v9 = vmul.f32 %v25_v6, %v23_v7 }
  0x80   :  { %v436_v10 = vadd.f32 %v26_v9, %v20_v8 }
  0x82   :  { %v31_v11 = vand.u32 2139095040, %v436_v10  ;;  %v28_v14 = vand.u32 2147483647, %v436_v10  ;;  %vm30_vm12 = vcmp.lt.s32.totalorder %v436_v10, 0 }
  0x84   :  { %v32_v12 = vshrl.u32 %v31_v11, 23  ;;  %v35_v17 = vand.u32 8388607, %v28_v14  ;;  %vm29_vm13 = vcmp.le.f32.partialorder %v28_v14, 0.7853982 }
  0x86   :  { %v360_v13 = vadd.s32 4294967169, %v32_v12  ;;  %v36_v21 = vor.u32 8388608, %v35_v17 }
  0x88   :  { %v38_v15 = vadd.s32 1, %v360_v13  ;;  %v453_v43 = vshll.u32 %v36_v21, 8 }
  0x8a   :  { %vm39_vm0 = vcmp.gt.s32.totalorder %v38_v15, 0  ;;  %v77_v52 = vand.u32 65535, %v453_v43  ;;  %v78_v53 = vshrl.u32 %v453_v43, 16 }
  0x8b   :  { %v40_v16 = vsel %vm39_vm0, %v38_v15, 0 }
  0x8c   :  { %v42_v18 = vand.u32 31, %v40_v16  ;;  %v444_v20 = vshrl.u32 %v40_v16, 5 }
  0x8e   :  { %v442_v19 = vsub.s32 32, %v42_v18  ;;  %v45_v23 = vshll.u32 %v406_v22, %v42_v18  ;;  %v48_v25 = vshll.u32 %v407_v24, %v42_v18  ;;  %v51_v29 = vshll.u32 %v408_v27, %v42_v18 }
  0x8f   :  { %v54_v32 = vshll.u32 %v409_v30, %v42_v18  ;;  %v57_v35 = vshll.u32 %v410_v33, %v42_v18  ;;  %vm60_vm1 = vcmp.lt.s32.totalorder %v444_v20, 1  ;;  %vm63_vm2 = vcmp.lt.s32.totalorder %v444_v20, 4 }
  0x90   :  { %v46_v26 = vshrl.u32 %v407_v24, %v442_v19  ;;  %v49_v28 = vshrl.u32 %v408_v27, %v442_v19  ;;  %v52_v31 = vshrl.u32 %v409_v30, %v442_v19  ;;  %v55_v34 = vshrl.u32 %v410_v33, %v442_v19 }
  0x91   :  { %v58_v37 = vshrl.u32 %v411_v36, %v442_v19  ;;  %vm62_vm3 = vcmp.lt.s32.totalorder %v444_v20, 3  ;;  %vm61_vm4 = vcmp.lt.s32.totalorder %v444_v20, 2  ;;  %v44_v17 = vshrl.u32 %v406_v22, %v442_v19 }
  0x92   :  { %v47_v38 = vor.u32 %v46_v26, %v45_v23  ;;  %v50_v39 = vor.u32 %v49_v28, %v48_v25  ;;  %v53_v40 = vor.u32 %v52_v31, %v51_v29  ;;  %v56_v41 = vor.u32 %v55_v34, %v54_v32 }
  0x93   :  { %v59_v42 = vor.u32 %v58_v37, %v57_v35 }
  0x94   :  { %v68_v44 = vsel %vm60_vm1, %v47_v38, %v50_v39  ;;  %v72_v45 = vsel %vm60_vm1, %v50_v39, %v53_v40  ;;  %v69_v46 = vsel %vm63_vm2, %v56_v41, 920167782  ;;  %v65_v13 = vsel %vm63_vm2, %v53_v40, 2102212464 }
  0x95   :  { %v73_v47 = vsel %vm63_vm2, %v59_v42, 1326507024  ;;  %v70_v48 = vsel %vm62_vm3, %v53_v40, %v69_v46  ;;  %v64_v26 = vsel %vm60_vm1, %v44_v17, %v47_v38  ;;  %v66_v27 = vsel %vm62_vm3, %v50_v39, %v65_v13 }
  0x96   :  { %v74_v49 = vsel %vm62_vm3, %v56_v41, %v73_v47  ;;  %v71_v50 = vsel %vm61_vm4, %v68_v44, %v70_v48  ;;  %v67_v19 = vsel %vm61_vm4, %v64_v26, %v66_v27 }
  0x97   :  { %v75_v51 = vsel %vm61_vm4, %v72_v45, %v74_v49  ;;  %v101_v56 = vand.u32 65535, %v71_v50  ;;  %v102_v57 = vshrl.u32 %v71_v50, 16  ;;  %v121_v34 = vmul.u32 %v453_v43, %v67_v19 }
  0x98   :  { %v79_v54 = vand.u32 65535, %v75_v51  ;;  %v80_v55 = vshrl.u32 %v75_v51, 16  ;;  %vm171_vm4 = vweird.f32 %v436_v10 }
  0x99   :  { %v104_v60 = vmul.u32 %v102_v57, %v77_v52  ;;  %v105_v61 = vmul.u32 %v101_v56, %v78_v53  ;;  %v103_v2 = vmul.u32 %v101_v56, %v77_v52  ;;  %v106_v6 = vmul.u32 %v102_v57, %v78_v53 }
  0x9a   :  { %v82_v58 = vmul.u32 %v80_v55, %v77_v52  ;;  %v83_v59 = vmul.u32 %v79_v54, %v78_v53  ;;  %v81_v62 = vmul.u32 %v79_v54, %v77_v52  ;;  %v84_v0 = vmul.u32 %v80_v55, %v78_v53 }
  0x9b   :  { %v107_v3 = vshll.u32 %v104_v60, 16  ;;  %v109_v8 = vshll.u32 %v105_v61, 16  ;;  %v108_v24 = vshrl.u32 %v104_v60, 16  ;;  %v110_v30 = vshrl.u32 %v105_v61, 16 }
  0x9c   :  { %v85_v63 = vshll.u32 %v82_v58, 16  ;;  %v87_v4 = vshll.u32 %v83_v59, 16  ;;  %v86_v18 = vshrl.u32 %v82_v58, 16  ;;  %v88_v28 = vshrl.u32 %v83_v59, 16 }
  0x9d   :  { %vm111_vm6 = vc.u32 %v103_v2, %v107_v3  ;;  %v113_v9 = vadd.s32 %v107_v3, %v103_v2 }
  0x9e   :  { %vm89_vm5 = vc.u32 %v81_v62, %v85_v63  ;;  %v91_v5 = vadd.s32 %v85_v63, %v81_v62  ;;  %v112_v12 = vsel %vm111_vm6, 1, %v404_v1 }
  0x9f   :  { %v90_v7 = vsel %vm89_vm5, 1, %v404_v1  ;;  %v114_v16 = vadd.s32 %v112_v12, %v106_v6  ;;  %vm115_vm8 = vc.u32 %v113_v9, %v109_v8  ;;  %v117_v33 = vadd.s32 %v113_v9, %v109_v8 }
  0xa0   :  { %v92_v11 = vadd.s32 %v90_v7, %v84_v0  ;;  %vm93_vm7 = vc.u32 %v91_v5, %v87_v4  ;;  %v116_v23 = vsel %vm115_vm8, 1, %v404_v1  ;;  %vm341_vm5 = vcmask 523264  }
  0xa1   :  { %v94_v15 = vsel %vm93_vm7, 1, %v404_v1  ;;  %v118_v25 = vadd.s32 %v116_v23, %v114_v16 }
  0xa2   :  { %v96_v21 = vadd.s32 %v94_v15, %v92_v11 }
  0xa3   :  { %v119_v31 = vadd.s32 %v118_v25, %v108_v24 }
  0xa4   :  { %v97_v29 = vadd.s32 %v96_v21, %v86_v18 }
  0xa5   :  { %v120_v22 = vadd.s32 %v119_v31, %v110_v30 }
  0xa6   :  { %v98_v32 = vadd.s32 %v97_v29, %v88_v28 }
  0xa7   :  { %v124_v1 = vadd.s32 1, %v120_v22 }
  0xa8   :  { %vm123_vm9 = vc.u32 %v98_v32, %v117_v33  ;;  %v122_v20 = vadd.s32 %v117_v33, %v98_v32 }
  0xa9   :  { %v125_v35 = vsel %vm123_vm9, %v124_v1, %v120_v22 }
  0xaa   :  { %v126_v36 = vadd.s32 %v125_v35, %v121_v34 }
  0xac   :  { %v127_v37 = vadd.s32 536870912, %v126_v36 }
  0xae   :  { %v128_v38 = vshrl.u32 %v127_v37, 30 }
  0xb0   :  { %v129_v40 = vshll.u32 %v128_v38, 30  ;;  %v152_v58 = vsub.s32 4, %v128_v38 }
  0xb2   :  { %v130_v39 = vsub.s32 %v126_v36, %v129_v40  ;;  %v153_v62 = vsel %vm30_vm12, %v152_v58, %v128_v38 }
  0xb3   :  { %v155_v2 = vsel %vm29_vm13, 0, %v153_v62 }
  0xb4   :  { %vm131_vm10 = vcmp.lt.s32.totalorder %v130_v39, 0  ;;  %v132_v41 = vsub.s32 0, %v130_v39  ;;  %v172_v7 = vadd.s32 3, %v155_v2  ;;  %v327_v16 = vand.u32 3, %v155_v2 }
  0xb6   :  { %v133_v42 = vsel %vm131_vm10, %v132_v41, %v130_v39  ;;  %v173_v13 = vand.u32 3, %v172_v7  ;;  %vm328_vm0 = vcmp.lt.s32.totalorder %v327_v16, 2  ;;  %vm329_vm1 = vcmp.eq.s32.totalorder %v327_v16, 0 }
  0xb7   :  { %v134_v44 = vclz %v133_v42  ;;  %vm332_vm2 = vcmp.eq.s32.totalorder %v327_v16, 2 }
  0xb8   :  { %vm178_vm14 = vcmp.eq.s32.totalorder %v173_v13, 2  ;;  %vm175_vm15 = vcmp.eq.s32.totalorder %v173_v13, 0  ;;  %vm174_vm3 = vcmp.lt.s32.totalorder %v173_v13, 2 }
  0xb9   :  { %v361_v45 = vadd.s32 4294967294, %v134_v44 }
  0xbb   :  { %vm362_vm11 = vcmp.lt.s32.totalorder %v361_v45, 0 }
  0xbc   :  { %v137_v46 = vsel %vm362_vm11, 0, %v361_v45 }
  0xbd   :  { %v138_v47 = vsub.s32 32, %v137_v46  ;;  %v142_v48 = vsub.s32 4294967266, %v137_v46  ;;  %v139_v49 = vshll.u32 %v130_v39, %v137_v46 }
  0xbf   :  { %v140_v50 = vshrl.u32 %v122_v20, %v138_v47  ;;  %v143_v51 = vadd.s32 127, %v142_v48 }
  0xc1   :  { %v141_v43 = vor.u32 %v140_v50, %v139_v49  ;;  %v144_v52 = vshll.u32 %v143_v51, 23 }
  0xc3   :  { %v145_v53 = vor.u32 4788187, %v144_v52  ;;  %v148_v55 = vcvt.s32.f32 %v141_v43 }
  0xc5   :  { %v146_v54 = vand.u32 2147483647, %v145_v53 }
  0xc7   :  { %v149_v56 = vmul.f32 %v148_v55, %v146_v54 }
  0xc9   :  { %v150_v57 = vxor.u32 2147483648, %v149_v56 }
  0xcb   :  { %v151_v59 = vsel %vm30_vm12, %v150_v57, %v149_v56 }
  0xcc   :  { %v154_v60 = vsel %vm29_vm13, %v436_v10, %v151_v59 }
  0xcd   :  { %v156_v61 = vmul.f32 %v154_v60, %v154_v60 }
  0xcf   :  { %v157_v63 = vmul.f32 -0.001358992, %v156_v61  ;;  %v164_v0 = vmul.f32 -0.00019511016, %v156_v61 }
  0xd1   :  { %v158_v3 = vadd.f32 0.041655596, %v157_v63  ;;  %v165_v4 = vadd.f32 0.008332121, %v164_v0 }
  0xd3   :  { %v159_v5 = vmul.f32 %v158_v3, %v156_v61  ;;  %v166_v6 = vmul.f32 %v165_v4, %v156_v61 }
  0xd5   :  { %v160_v8 = vadd.f32 -0.4999988, %v159_v5  ;;  %v167_v9 = vadd.f32 -0.16666654, %v166_v6 }
  0xd7   :  { %v161_v11 = vmul.f32 %v160_v8, %v156_v61  ;;  %v168_v12 = vmul.f32 %v167_v9, %v156_v61 }
  0xd9   :  { %v162_v15 = vadd.f32 1.0, %v161_v11  ;;  %v169_v14 = vadd.f32 1.0, %v168_v12 }
  0xdb   :  { %v170_v17 = vmul.f32 %v169_v14, %v154_v60  ;;  %v179_v18 = vxor.u32 2147483648, %v162_v15 }
  0xdd   :  { %v176_v21 = vxor.u32 2147483648, %v170_v17  ;;  %v180_v23 = vsel %vm178_vm14, %v179_v18, %v170_v17  ;;  %v334_v25 = vsel %vm332_vm2, %v179_v18, %v170_v17 }
  0xdf   :  { %v331_v24 = vsel %vm329_vm1, %v162_v15, %v176_v21  ;;  %v177_v26 = vsel %vm175_vm15, %v162_v15, %v176_v21 }
  0xe0   :  { %v335_v27 = vsel %vm328_vm0, %v331_v24, %v334_v25  ;;  %v181_v28 = vsel %vm174_vm3, %v177_v26, %v180_v23 }
  0xe1   :  { %v336_v29 = vsel %vm171_vm4, nan, %v335_v27  ;;  %v182_v30 = vsel %vm171_vm4, nan, %v181_v28 }
  0xe2   :  { %338 = vrot.lane.b32.xlu1 %v336_v29, %s412_s0 }
 0x154   :  { %v339_v31 = vpop.permute.xlu1 %338 }
 0x155   :  { %v342_v32 = vsel %vm341_vm5, %v182_v30, %v339_v31 }
 0x156   :  { %343 = vst [vmem:[#allocation2] sm:$0xff] %v342_v32 }
 0x157   :  { %354 = dma.vmem_to_hbm [thread:$0]  %s350_s13, 128, %s352_s16, [#allocation3]  }
 0x158   :  { %402 = dma.done.wait [#allocation3], 128  }
 0x159   :  { %403 = vsyncadd [#allocation3], 4294967168 }
 0x15a   :  { %359 = vsyncpa [#allocation3], 1 }

</bundles_post_ra>
